<compile_context>
chip_gen: v7x
topology: tpu7x:2x2x1
jax: 0.10.0
libtpu: 0.0.40
codegen_flags: <defaults>
</compile_context>

<pallas_src>
import math

import jax
import jax.numpy as jnp
from jax.experimental import pallas as pl
from jax.experimental.pallas import tpu as pltpu


def _no_mean_linear_kernel(x_ref, w_ref, mean_ref, b_ref, o_ref):
    # x_ref:    (TM, F)  float32   -- TM rows of the flattened (S*B, F) input
    # w_ref:    (F, Ep)  bfloat16  -- resident weight (Ep = E padded to 128k)
    # mean_ref: (B, F)   float32   -- resident per-batch mean over the full S
    # b_ref:    (1, Ep)  float32   -- resident bias
    # o_ref:    (TM, Ep) float32
    tm = x_ref.shape[0]
    bsz = mean_ref.shape[0]

    w = w_ref[...]  # bf16 MXU operand, already resident in VMEM

    # Main matmul on the MXU (bf16 operands, f32 accumulation).
    xw = jnp.dot(x_ref[...].astype(jnp.bfloat16), w,
                 preferred_element_type=jnp.float32)           # (TM, Ep)

    # Folded mean:  (x - mean) @ W + bias  ==  x @ W + (bias - mean @ W).
    # mean@W is a tiny (B,F)x(F,Ep) matmul; recomputed per tile but completely
    # hidden under the MXU slack of this HBM-bound kernel.
    mw = jnp.dot(mean_ref[...].astype(jnp.bfloat16), w,
                 preferred_element_type=jnp.float32)           # (B, Ep)
    corr = b_ref[...] - mw                                     # (B, Ep), f32

    # Rows of a flattened (S*B, F) slab cycle through batch index (row % B).
    # tm % B == 0 by construction, so the per-row correction inside a tile is
    # just the (B, Ep) correction repeated periodically along the rows.
    o_ref[...] = (xw + jnp.tile(corr, (tm // bsz, 1))).astype(o_ref.dtype)


def no_mean_encoder(x, weight, bias, *, block_m=512):
    """NoMeanEncoder forward: Linear(x - x.mean(0, keepdim=True)).

    x: (S, B, F); weight: (F, E); bias: (E,).  Returns (S, B, E) in x.dtype.
    """
    S, B, F = x.shape
    E = weight.shape[1]
    out_dtype = x.dtype

    # ---- wrapper-side prep (layout-only / tiny ops) -------------------------
    # Full-sequence mean (needs all of S, so it can't be taken per row tile).
    mean0 = jnp.mean(x.astype(jnp.float32), axis=0)                    # (B, F)

    # Lane-dense output: pad E up to a multiple of 128 (zero pad is harmless,
    # padded columns are sliced off below).
    Ep = -(-E // 128) * 128
    w_p = jnp.pad(weight, ((0, 0), (0, Ep - E))).astype(jnp.bfloat16)  # (F, Ep)
    b_p = jnp.pad(bias, (0, Ep - E)).astype(jnp.float32).reshape(1, Ep)

    # Flatten to a 2-D row-major slab (free reshape; rows cycle through b).
    M = S * B
    x2 = x.astype(jnp.float32).reshape(M, F)

    # Row-tile size: multiple of 8 (sublanes) and of B (so the per-row mean
    # correction is a simple periodic pattern inside each tile).
    unit = (8 * B) // math.gcd(8, B)             # lcm(8, B)
    tm = max(unit, (block_m // unit) * unit)
    tm = min(tm, -(-M // unit) * unit)           # don't exceed (rounded-up) M
    Mp = -(-M // tm) * tm
    if Mp != M:
        x2 = jnp.pad(x2, ((0, Mp - M), (0, 0)))  # padded rows are sliced off

    grid = (Mp // tm,)

    out = pl.pallas_call(
        _no_mean_linear_kernel,
        out_shape=jax.ShapeDtypeStruct((Mp, Ep), jnp.float32),
        grid_spec=pltpu.PrefetchScalarGridSpec(
            num_scalar_prefetch=0,
            grid=grid,
            in_specs=[
                pl.BlockSpec((tm, F), lambda i: (i, 0)),   # x rows: streamed
                pl.BlockSpec((F, Ep), lambda i: (0, 0)),   # W: resident
                pl.BlockSpec((B, F), lambda i: (0, 0)),    # mean: resident
                pl.BlockSpec((1, Ep), lambda i: (0, 0)),   # bias: resident
            ],
            out_specs=pl.BlockSpec((tm, Ep), lambda i: (i, 0)),
        ),
        # Row tiles are independent -> shard across both TCs on v7x.
        # Blocks are small (few MB double-buffered), so the default scoped
        # VMEM limit is plenty on all of v5e/v6e/v7x.
        compiler_params=pltpu.CompilerParams(
            dimension_semantics=("parallel",)),
    )(x2, w_p, mean0, b_p)

    return out[:M, :E].reshape(S, B, E).astype(out_dtype)


if __name__ == "__main__":
    # Small shapes consistent with the module: seq=12, batch=2, features=32,
    # hidden=32.  block_m=16 forces a multi-step grid (and exercises the M- and
    # E-padding paths) even at these tiny demo shapes.
    S, B, F, E = 12, 2, 32, 32

    key = jax.random.PRNGKey(0)
    kx, kw, kb = jax.random.split(key, 3)

    x = jax.random.normal(kx, (S, B, F), dtype=jnp.float32)
    bound = 1.0 / (F ** 0.5)
    weight = jax.random.uniform(kw, (F, E), minval=-bound, maxval=bound,
                                dtype=jnp.float32)
    bias = jax.random.uniform(kb, (E,), minval=-bound, maxval=bound,
                              dtype=jnp.float32)

    out = no_mean_encoder(x, weight, bias, block_m=16)
    out = jax.block_until_ready(out)

    # Exact f32 reference of the module's forward semantics.  The kernel uses
    # bf16 MXU operands (per perf guidance for v6e/v7x), so compare with a
    # bf16-appropriate tolerance.
    ref = (x - x.mean(axis=0, keepdims=True)) @ weight + bias
    assert out.shape == (S, B, E)
    assert jnp.allclose(out, ref, atol=1e-2, rtol=1e-2), float(
        jnp.max(jnp.abs(out - ref)))

    print("KERNEL_OK")
</pallas_src>

<mosaic_0001>
module attributes {stable_mosaic.version = 11 : i64} {
  func.func @_no_mean_linear_kernel(%arg0: i32, %arg1: memref<16x32xf32, #tpu.memory_space<vmem>>, %arg2: memref<32x128xbf16, #tpu.memory_space<vmem>>, %arg3: memref<2x32xf32, #tpu.memory_space<vmem>>, %arg4: memref<1x128xf32, #tpu.memory_space<vmem>>, %arg5: memref<16x128xf32, #tpu.memory_space<vmem>>) attributes {dimension_semantics = [#tpu.dimension_semantics<parallel>], iteration_bounds = array<i64: 2>, scalar_prefetch = 0 : i64, scratch_operands = 0 : i64, tpu.core_type = #tpu.core_type<tc>, window_params = [{transform_indices = @transform_0, window_bounds = array<i64: 16, 32>}, {pipeline_mode = #tpu.pipeline_mode<synchronous>, transform_indices = @transform_1, window_bounds = array<i64: 32, 128>}, {pipeline_mode = #tpu.pipeline_mode<synchronous>, transform_indices = @transform_2, window_bounds = array<i64: 2, 32>}, {pipeline_mode = #tpu.pipeline_mode<synchronous>, transform_indices = @transform_3, window_bounds = array<i64: 1, 128>}, {transform_indices = @transform_4, window_bounds = array<i64: 16, 128>}]} {
    %c0 = arith.constant 0 : index
    %c0_0 = arith.constant 0 : index
    %0 = vector.load %arg2[%c0, %c0_0] : memref<32x128xbf16, #tpu.memory_space<vmem>>, vector<32x128xbf16>
    %c0_1 = arith.constant 0 : index
    %c0_2 = arith.constant 0 : index
    %1 = vector.load %arg1[%c0_1, %c0_2] : memref<16x32xf32, #tpu.memory_space<vmem>>, vector<16x32xf32>
    %2 = arith.truncf %1 : vector<16x32xf32> to vector<16x32xbf16>
    %cst = arith.constant dense<0.000000e+00> : vector<16x128xf32>
    %3 = tpu.matmul %2, %0, %cst {dimension_numbers = #tpu.dot_dimension_numbers<[1], [0], [0], [1], [0, 0, 1, 1], [], []>} : vector<16x32xbf16>, vector<32x128xbf16>, vector<16x128xf32> -> vector<16x128xf32>
    %c0_3 = arith.constant 0 : index
    %c0_4 = arith.constant 0 : index
    %4 = vector.load %arg3[%c0_3, %c0_4] : memref<2x32xf32, #tpu.memory_space<vmem>>, vector<2x32xf32>
    %5 = arith.truncf %4 : vector<2x32xf32> to vector<2x32xbf16>
    %cst_5 = arith.constant dense<0.000000e+00> : vector<2x128xf32>
    %6 = tpu.matmul %5, %0, %cst_5 {dimension_numbers = #tpu.dot_dimension_numbers<[1], [0], [0], [1], [0, 0, 1, 1], [], []>} : vector<2x32xbf16>, vector<32x128xbf16>, vector<2x128xf32> -> vector<2x128xf32>
    %c0_6 = arith.constant 0 : index
    %c0_7 = arith.constant 0 : index
    %7 = vector.load %arg4[%c0_6, %c0_7] : memref<1x128xf32, #tpu.memory_space<vmem>>, vector<1x128xf32>
    %8 = vector.broadcast %7 : vector<1x128xf32> to vector<2x128xf32>
    %9 = arith.subf %8, %6 : vector<2x128xf32>
    %10 = tpu.concatenate %9, %9, %9, %9, %9, %9, %9, %9 in 0 : vector<2x128xf32>, vector<2x128xf32>, vector<2x128xf32>, vector<2x128xf32>, vector<2x128xf32>, vector<2x128xf32>, vector<2x128xf32>, vector<2x128xf32> -> vector<16x128xf32>
    %11 = arith.addf %3, %10 : vector<16x128xf32>
    %c0_8 = arith.constant 0 : index
    %c0_9 = arith.constant 0 : index
    %12 = vector.load %arg5[%c0_8, %c0_9] : memref<16x128xf32, #tpu.memory_space<vmem>>, vector<16x128xf32>
    tpu.vector_store %arg5[%c0_8, %c0_9], %11 {strides = array<i32>} : memref<16x128xf32, #tpu.memory_space<vmem>>, vector<16x128xf32>,
    return
  }
  func.func @transform_0(%arg0: i32) -> (i32, i32) {
    %c0_i32 = arith.constant 0 : i32
    %c0_i32_0 = arith.constant 0 : i32
    return %arg0, %c0_i32 : i32, i32
  }
  func.func @transform_1(%arg0: i32) -> (i32, i32) {
    %c0_i32 = arith.constant 0 : i32
    %c0_i32_0 = arith.constant 0 : i32
    %c0_i32_1 = arith.constant 0 : i32
    return %c0_i32, %c0_i32_0 : i32, i32
  }
  func.func @transform_2(%arg0: i32) -> (i32, i32) {
    %c0_i32 = arith.constant 0 : i32
    %c0_i32_0 = arith.constant 0 : i32
    %c0_i32_1 = arith.constant 0 : i32
    return %c0_i32, %c0_i32_0 : i32, i32
  }
  func.func @transform_3(%arg0: i32) -> (i32, i32) {
    %c0_i32 = arith.constant 0 : i32
    %c0_i32_0 = arith.constant 0 : i32
    %c0_i32_1 = arith.constant 0 : i32
    return %c0_i32, %c0_i32_0 : i32, i32
  }
  func.func @transform_4(%arg0: i32) -> (i32, i32) {
    %c0_i32 = arith.constant 0 : i32
    %c0_i32_0 = arith.constant 0 : i32
    return %arg0, %c0_i32 : i32, i32
  }
}

</mosaic_0001>

<bundles_post_ra>
// kernel: tpu_custom_call.1
= control target key start
LH: loop header
LB: loop body
LE: loop exit
PB: predicated region body
PF: predicated region fallthrough
CT: control target
= control target key end

     0   :  { %9 = vsyncpa [#allocation3], 0  ;;  %s952_s0 = inlined_call_operand.hbm [shape: f32[32,32], index: 0, kind: input, shape index: {}]   ;;  %s953_s1 = inlined_call_operand.hbm [shape: bf16[32,128], index: 1, kind: input, shape index: {}]   ;;  %s954_s2 = inlined_call_operand.vmem [shape: f32[2,32], index: 2, kind: input, shape index: {}]   ;;  %s955_s3 = inlined_call_operand.vmem [shape: f32[1,128], index: 3, kind: input, shape index: {}]   ;;  %s956_s4 = inlined_call_operand.hbm [shape: f32[32,128], index: 4, kind: output, shape index: {}]  }
   0x1   :  { %11 = vsyncpa [#allocation3 + $0x1], 0 }
   0x2   :  { %12 = vsyncpa [#allocation6], 0 }
   0x3   :  { %13 = vsyncpa [#allocation4], 0 }
   0x4   :  { %15 = vsyncpa [#allocation4 + $0x1], 0  ;;  %s741_s15 = smov 0   ;;  %s743_s16 = smov 0  }
   0x5   :  { %s745_s17 = smov 0   ;;  %s747_s18 = smov 0  }
   0x6 LB: > { %s762_s19 = sadd.s32 4294967295, %s703_s18   ;;  %s463_s20 = sadd.s32 4294967294, %s703_s18   ;;  %s703_s18 = sphi %s747_s18, %s976_s18   ;;  %s699_s17 = sphi %s745_s17, %s975_s17   ;;  %s695_s16 = sphi %s743_s16, %s974_s16   ;;  %s691_s15 = sphi %s741_s15, %s973_s15  }
   0x7   : > { %p41_p0 = scmp.ne.s32.totalorder %s695_s16, %s691_s15  ;;  %p957_p1 = scmp.eq.s32.totalorder %s762_s19, 0 }
   0x8   : > { %p134_p3 = scmp.eq.s32.totalorder %s463_s20, 1  ;;  %p464_p5 = scmp.ge.s32.totalorder %s703_s18, 1 }
   0x9   : > { %p771_p4 = por %p957_p1, %p41_p0  ;;  %p141_p7 = scmp.lt.s32.totalorder %s703_s18, 3 }
   0xa   : > { %p776_p6 = por %p134_p3, %p41_p0  ;;  %s705_s24 = smov [#allocation5]  }
   0xb   : > { %s960_s21 = scalar_select %p771_p4, 1, 0 }
   0xc   : > { %s961_s22 = scalar_select %p776_p6, 1, 0 }
   0xd   : > { %p781_p8 = pnand %p464_p5, %p141_p7  ;;  %s153_s25 = sshll.u32 %s705_s24, 4  ;;  %s785_s25 = int_to_ptr.vmem [resolvable:$true] %s153_s25 }
   0xe   : > { %s797_s27 = sadd.s32 1, %s703_s18   ;;  %s28_s28 = sadd.s32 1, %s699_s17 }
   0xf   : > { %s962_s23 = scalar_select %p781_p8, 1, 0 }
  0x10   : > { %p516_p9 = pneg %p781_p8  ;;  %s25_s29 = ssub.s32 %s703_s18, %s797_s27 }
  0x11   : > { %s575_s6 = scalar_lea.hbm %s953_s1, 256 }
  0x12   : > { %p792_p11 = pnand %p516_p9, %p957_p1  ;;  %p576_p12 = scmp.ne.s32.totalorder %s953_s1, %s575_s6 }
  0x13   : > { %p582_p5 = scmp.lt.u32.totalorder %s575_s6, %s953_s1 }
  0x14   : > { %p577_p13 = pneg %p792_p11 }
  0x16   : > { %p578_p0 = pnand %p577_p13, %p576_p12 }
  0x18   : > { %p579_p3 = pneg %p578_p0 }
  0x1a   : > { %p584_p7 = pnand %p582_p5, %p579_p3 }
  0x1c   : > { %587 = shalt.err (!%p584_p7)
}
  0x1d   : > { %s588_s11 = scalar_lea.vmem %s785_s25, 256  ;;  %p596_p2 = scmp.lt.s32.totalorder %s785_s25, %s785_s25 }
  0x1e   : > { %p589_p9 = scmp.ne.s32.totalorder %s785_s25, %s588_s11  ;;  %p597_p6 = scmp.lt.s32.totalorder %s588_s11, %s588_s11 }
  0x20   : > { %p591_p10 = pnand %p589_p9, %p577_p13  ;;  %p598_p4 = por %p597_p6, %p596_p2 }
  0x22   : > { %p592_p1 = pneg %p591_p10 }
  0x24   : > { %p599_p8 = pnand %p598_p4, %p592_p1 }
  0x26   : > { %602 = shalt.err (!%p599_p8)
}
  0x27   : > { %s706_s12 = smov 64   ;;  %s707_s13 = smov 4  }
  0x28   : > { %519 = dma.hbm_to_vmem [thread:$0]  (!%p792_p11), %s953_s1, 256, %s785_s25, [#allocation6], %s706_s12, %s706_s12, %s707_s13  }
  0x29   : > { %p26_p2 = scmp.eq.s32.totalorder %s25_s29, 0  ;;  %p35_p1 = scmp.ne.s32.totalorder %s699_s17, %s695_s16 }
  0x2a   : > { %p36_p4 = scmp.eq.s32.totalorder %s703_s18, 0  ;;  %p529_p6 = scmp.lt.s32.totalorder %s703_s18, 2 }
  0x2b   : > { %s828_s24 = scalar_select %p26_p2, %s699_s17, %s28_s28  }
  0x2c   : > { %p37_p8 = por %p36_p4, %p35_p1  ;;  %p964_p10 = scmp.eq.s32.totalorder %s762_s19, 1 }
  0x2d   : > { %s173_s5 = sand.u32 1, %s699_s17   ;;  %s484_s6 = sshll.u32 %s703_s18, 8 }
  0x2e   : > { %p832_p12 = por %p964_p10, %p35_p1  ;;  %s467_s7 = sshll.u32 %s173_s5, 4 }
  0x2f   : > { %s841_s9 = scalar_lea.hbm %s952_s0, %s484_s6  ;;  %s177_s25 = scalar_lea.vmem [#allocation2], %s467_s7 }
  0x30   : > { %s184_s28 = sshll.u32 %s177_s25, 4  ;;  %p843_p11 = pnand %p529_p6, %p37_p8  ;;  %s847_s28 = int_to_ptr.vmem [resolvable:$true] %s184_s28 }
  0x31   : > { %s849_s10 = scalar_lea.sflag [#allocation3], %s173_s5  ;;  %s603_s11 = scalar_lea.hbm %s841_s9, 256 }
  0x32   : > { %p604_p13 = scmp.ne.s32.totalorder %s841_s9, %s603_s11  ;;  %p605_p0 = pneg %p843_p11 }
  0x33   : > { %s608_s14 = scalar_lea.hbm %s952_s0, 512  ;;  %p609_p7 = scmp.lt.u32.totalorder %s841_s9, %s952_s0 }
  0x34   : > { %p606_p3 = pnand %p605_p0, %p604_p13  ;;  %p610_p9 = scmp.lt.u32.totalorder %s608_s14, %s603_s11 }
  0x35   : > { %p612_p1 = scmp.lt.u32.totalorder %s603_s11, %s841_s9 }
  0x36   : > { %p607_p5 = pneg %p606_p3  ;;  %p611_p2 = por %p610_p9, %p609_p7 }
  0x38   : > { %p613_p4 = por %p612_p1, %p611_p2 }
  0x3a   : > { %p614_p6 = pnand %p613_p4, %p607_p5 }
  0x3c   : > { %617 = shalt.err (!%p614_p6)
}
  0x3d   : > { %s618_s5 = scalar_lea.vmem %s847_s28, 256  ;;  %s708_s7 = smov [#allocation2]  }
  0x3e   : > { %p619_p8 = scmp.ne.s32.totalorder %s847_s28, %s618_s5  ;;  %s623_s26 = sshll.u32 %s708_s7, 4  ;;  %s624_s26 = int_to_ptr.vmem [resolvable:$false] %s623_s26 }
  0x3f   : > { %s625_s8 = scalar_lea.vmem %s624_s26, 512  ;;  %p626_p3 = scmp.lt.s32.totalorder %s847_s28, %s624_s26 }
  0x40   : > { %p621_p10 = pnand %p619_p8, %p605_p0  ;;  %p627_p7 = scmp.lt.s32.totalorder %s625_s8, %s618_s5 }
  0x42   : > { %p622_p13 = pneg %p621_p10  ;;  %p628_p9 = por %p627_p7, %p626_p3 }
  0x44   : > { %p629_p2 = pnand %p628_p9, %p622_p13 }
  0x46   : > { %632 = shalt.err (!%p629_p2)
}
  0x47   : > { %s709_s25 = smov 128   ;;  %s710_s11 = smov 8  }
  0x48   : > { %523 = dma.hbm_to_vmem [thread:$0]  (!%p843_p11), %s841_s9, 256, %s847_s28, %s849_s10, %s709_s25, %s709_s25, %s710_s11  }
  0x49   : > { %p967_p0 = scmp.ne.s32.totalorder %s962_s23, 0 }
  0x4a   : > { %s880_s12 = sand.u32 (!%p967_p0), 1, %s695_s16   ;;  %p968_p5 = scmp.ne.s32.totalorder (!%p967_p0), %s960_s21, 0 }
  0x4b   : > { %196 = sbr.rel (%p967_p0) target bundleno = 332 (0x14c), region = 36  ;;  %s471_s13 = sshll.u32 (!%p967_p0), %s880_s12, 4 }
  0x4c   : > { %s199_s14 = scalar_lea.sflag (!%p967_p0), [#allocation3], %s880_s12  ;;  %s202_s20 = scalar_lea.vmem (!%p967_p0), [#allocation2], %s471_s13 }
  0x52   : > { %678 = dma.done.wait (%p968_p5), %s199_s14, 256  }
  0x53   : > { %680 = vsyncadd (%p968_p5), %s199_s14, 4294967040  ;;  %p969_p11 = scmp.eq.s32.totalorder %s762_s19, 0 }
  0x55   : > { %682 = dma.done.wait (%p969_p11), [#allocation6], 256   ;;  %p970_p1 = pmov %p969_p11 }
  0x56   : > { %v711_v0 = vmov 0.0   ;;  %vm712_vm0 = vmmov 0   ;;  %v573_v1 = vld [vmem:[#allocation5] sm:$0xff]   ;;  %v574_v2 = vld [vmem:[#allocation5 + $0x8] sm:$0xff]   ;;  %vm255_vm1 = vcmask 261120   ;;  %vm314_vm2 = vcmask 1041408  }
  0x57   : > { %684 = vsyncadd (%p970_p1), [#allocation6], 4294967040  ;;  %492 = vmatprep.subr.bf16.mxu0 %v711_v0  ;;  %500 = vmatprep.subr.bf16.mxu1 %v711_v0  ;;  %v241_v3 = vld [vmem:[%s954_s2] sm:$0x3]  ;;  %v239_v5 = vld [vmem:[%s202_s20 + $0x8] sm:$0xff]  ;;  %vm316_vm3 = vcmask 1043456  }
  0x58   : > { %496 = vmatprep.mubr.msk.bf16.mxu0 %vm712_vm0, %v711_v0  ;;  %504 = vmatprep.mubr.msk.bf16.mxu1 %vm712_vm0, %v711_v0  ;;  %v238_v4 = vld [vmem:[%s202_s20] sm:$0xff]  ;;  %v242_v6 = vpack.c.bf16 %v241_v3, %v241_v3  ;;  %s230_s29 = scalar_lea.vmem [#allocation7], %s471_s13  ;;  %vm318_vm4 = vcmask 1045504   ;;  %s485_s6 = sshll.u32 %s762_s19, 8 }
  0x59   : > { %493 = vmatpush3.bf16.msra.mxu0 %v573_v1  ;;  %501 = vmatpush3.bf16.msra.mxu1 %v573_v1  ;;  %v240_v7 = vpack.c.bf16 %v239_v5, %v238_v4  ;;  %v477_v8 = vld [vmem:[%s955_s3] ss:$0 sm:$0xff]  ;;  %s380_s10 = sshll.u32 %s230_s29, 4  ;;  %s908_s26 = scalar_lea.hbm %s956_s4, %s485_s6  ;;  %s903_s10 = int_to_ptr.vmem [resolvable:$true] %s380_s10 }
  0x5a   : > { %494 = vmatprep.subr.bf16.mxu0 %v711_v0  ;;  %502 = vmatprep.subr.bf16.mxu1 %v711_v0  ;;  %s367_s8 = scalar_lea.sflag [#allocation4], %s880_s12  ;;  %s633_s19 = scalar_lea.vmem %s903_s10, 256 }
  0x5b   : > { %p634_p4 = scmp.ne.s32.totalorder %s903_s10, %s633_s19  ;;  %s713_s25 = smov [#allocation7]  }
  0x5c   : > { %s637_s11 = sshll.u32 %s713_s25, 4  ;;  %s638_s11 = int_to_ptr.vmem [resolvable:$false] %s637_s11 }
  0x5d   : > { %495 = vmatpush3.bf16.msra.mxu0 %v574_v2  ;;  %503 = vmatpush3.bf16.msra.mxu1 %v574_v2  ;;  %p635_p6 = pnand %p634_p4, %p832_p12  ;;  %s639_s13 = scalar_lea.vmem %s638_s11, 512 }
  0x5e   : > { %p640_p10 = scmp.lt.s32.totalorder %s903_s10, %s638_s11  ;;  %p641_p13 = scmp.lt.s32.totalorder %s639_s13, %s633_s19 }
  0x5f   : > { %p636_p8 = pneg %p635_p6 }
  0x60   : > { %497 = vmatmul.mubr.msk.bf16.vlgmr.msra.gmra.mrb[0].mxu0 %vm255_vm1, %v242_v6  ;;  %505 = vmatmul.mubr.msk.bf16.vlgmr.msra.gmra.mrb[0].mxu1 %vm255_vm1, %v240_v7  ;;  %p642_p3 = por %p641_p13, %p640_p10 }
  0x62   : > { %p643_p7 = pnand %p642_p3, %p636_p8 }
 0x133   : > { %v293_v9 = vpop.f32.mrb[0].mxu0  ;;  %v357_v10 = vpop.f32.mrb[0].mxu1 }
 0x134   : > { %v306_v11 = vsub.f32 %v477_v8, %v293_v9  ;;  %v498_v12 = vpop.f32.mrb[1].mxu0  ;;  %v506_v13 = vpop.f32.mrb[1].mxu1 }
 0x135   : > { %v296_v14 = vpop.f32.mrb[2].mxu0  ;;  %v360_v15 = vpop.f32.mrb[2].mxu1 }
 0x136   : > { %v308_v16 = vrot.slane %v306_v11, 6  ;;  %v310_v17 = vrot.slane %v306_v11, 4  ;;  %v499_v18 = vpop.f32.mrb[3].mxu0  ;;  %v507_v19 = vpop.f32.mrb[3].mxu1  ;;  %v312_v20 = vrot.slane %v306_v11, 2 }
 0x138   : > { %v315_v21 = vsel %vm314_vm2, %v306_v11, %v308_v16 }
 0x139   : > { %v317_v22 = vsel %vm316_vm3, %v315_v21, %v310_v17 }
 0x13a   : > { %v319_v23 = vsel %vm318_vm4, %v317_v22, %v312_v20 }
 0x13b   : > { %v358_v24 = vadd.f32 %v357_v10, %v319_v23  ;;  %v361_v25 = vadd.f32 %v360_v15, %v319_v23 }
 0x13d   : > { %364 = vst [vmem:[%s230_s29] sm:$0xff] %v358_v24  ;;  %365 = vst [vmem:[%s230_s29 + $0x8] sm:$0xff] %v361_v25 }
 0x13e   : > { %646 = shalt.err (!%p643_p7)
}
 0x13f   : > { %s647_s14 = scalar_lea.hbm %s908_s26, 256  ;;  %s651_s9 = scalar_lea.hbm %s956_s4, 512 }
 0x140   : > { %p648_p9 = scmp.ne.s32.totalorder %s908_s26, %s647_s14  ;;  %p652_p5 = scmp.lt.u32.totalorder %s908_s26, %s956_s4 }
 0x141   : > { %p653_p11 = scmp.lt.u32.totalorder %s651_s9, %s647_s14  ;;  %p655_p4 = scmp.lt.u32.totalorder %s647_s14, %s908_s26 }
 0x142   : > { %p649_p2 = pnand %p648_p9, %p832_p12 }
 0x143   : > { %p654_p1 = por %p653_p11, %p652_p5 }
 0x144   : > { %p650_p0 = pneg %p649_p2 }
 0x145   : > { %p656_p6 = por %p655_p4, %p654_p1 }
 0x147   : > { %p657_p8 = pnand %p656_p6, %p650_p0 }
 0x149   : > { %660 = shalt.err (!%p657_p8)
}
 0x14a   : > { %s714_s29 = smov 128   ;;  %s715_s6 = smov 8  }
 0x14b   : > { %514 = dma.vmem_to_hbm [thread:$0]  (%p832_p12), %s903_s10, 256, %s908_s26, %s367_s8, %s714_s29, %s714_s29, %s715_s6  }
 0x14c PF: > { %s395_s5 = sand.u32 1, %s691_s15   ;;  %p971_p10 = scmp.ne.s32.totalorder %s961_s22, 0 }
 0x14d   : > { %p972_p13 = scmp.ge.s32.totalorder %s703_s18, 2  ;;  %s396_s7 = scalar_lea.sflag [#allocation4], %s395_s5 }
 0x14f   : > { %p525_p3 = pnand %p972_p13, %p971_p10 }
 0x151   : > { %686 = dma.done.wait (!%p525_p3), %s396_s7, 256  }
 0x152   : > { %688 = vsyncadd (!%p525_p3), %s396_s7, 4294967040  ;;  %p18_p7 = scmp.ge.s32.totalorder %s797_s27, 4   ;;  %s973_s15 = smov %s695_s16 }
 0x153   : > { %s974_s16 = smov %s699_s17  ;;  %s975_s17 = smov %s828_s24 }
 0x154   : > { %s976_s18 = smov %s797_s27  ;;  %20 = sbr.rel (!%p18_p7) target bundleno = 6 (0x6), region = 85 }
 0x15b   :  { %401 = vsyncpa [#allocation3], 1 }
 0x15c   :  { %403 = vsyncpa [#allocation3 + $0x1], 1 }
 0x15d   :  { %404 = vsyncpa [#allocation6], 1 }
 0x15e   :  { %405 = vsyncpa [#allocation4], 1 }
 0x15f   :  { %407 = vsyncpa [#allocation4 + $0x1], 1 }

</bundles_post_ra>
